<compile_context>
chip_gen: v6e
topology: v6e:2x2x1
jax: 0.10.0
libtpu: 0.0.40
codegen_flags: <defaults>
</compile_context>

<pallas_src>
import functools

import jax
import jax.numpy as jnp
from jax import lax
from jax.experimental import pallas as pl
from jax.experimental.pallas import tpu as pltpu


def _boundary_kernel(pred_ref, gt_ref, out_ref, *,
                     theta0, theta, ignore_index, c_block, h_valid, w_valid):
    # pred_ref: (1, c_block, H, W) ; gt_ref: (1, H, W) i32 ; out_ref: (1, c_block, 1, 128)
    # H, W are the padded plane dims (H % 8 == 0, W % 128 == 0).
    _, H, W = gt_ref.shape
    r_max = max(theta0, theta) // 2
    cb = pl.program_id(1)

    gt = gt_ref[0, :, :]
    keep_b = gt != ignore_index
    keep = keep_b.astype(jnp.float32)                        # hoisted per grid step

    # ---------------- hoisted per-grid-step constants ----------------
    lane = lax.broadcasted_iota(jnp.int32, (H, W), 1)
    row = lax.broadcasted_iota(jnp.int32, (H, W), 0)

    # Validity mask of the logical (h_valid, w_valid) region inside the padded plane.
    if h_valid == H and w_valid == W:
        realmask = None
    else:
        realmask = jnp.logical_and(row < h_valid, lane < w_valid).astype(jnp.float32)

    def mask_real(x):
        return x if realmask is None else x * realmask

    # Wrap-validity masks for rolled windows: keep a destination position iff its
    # rolled-in source index is exactly |d| away (wrapped positions are size-|d|
    # away).  Computed from rolled iotas -> independent of the roll convention.
    lane_amt = {}
    row_amt = {}
    for d in range(1, r_max + 1):
        for a in (d, W - d):
            lane_amt[a] = (jnp.abs(pltpu.roll(lane, shift=a, axis=1) - lane) == d
                           ).astype(jnp.float32)
        for a in (d, H - d):
            row_amt[a] = (jnp.abs(pltpu.roll(row, shift=a, axis=0) - row) == d
                          ).astype(jnp.float32)

    # Lane selectors to pack the four per-class scalars into one lane-dense row.
    out_lane = lax.broadcasted_iota(jnp.int32, (1, 128), 1)
    m_pg = (out_lane == 0).astype(jnp.float32)
    m_p = (out_lane == 1).astype(jnp.float32)
    m_qg = (out_lane == 2).astype(jnp.float32)
    m_g = (out_lane == 3).astype(jnp.float32)

    ones_w = jnp.ones((W, 128), jnp.float32)   # column-reduce operand (MXU)
    ones_h = jnp.ones((8, H), jnp.float32)     # row-reduce operand (MXU)

    def maxpool_same(x, k):
        """k x k max pool, stride 1, 'same' (-inf) padding; exact for x >= 0 that is
        zero outside the logical region.  Fully in registers: lane rolls then
        sublane rolls (XLU), wrap-around handled by the hoisted masks (VALU)."""
        r = k // 2
        h = x
        for d in range(1, r + 1):
            for a in (d, W - d):
                h = jnp.maximum(h, pltpu.roll(x, shift=a, axis=1) * lane_amt[a])
        v = h
        for d in range(1, r + 1):
            for a in (d, H - d):
                v = jnp.maximum(v, pltpu.roll(h, shift=a, axis=0) * row_amt[a])
        return v

    def rowsum(x):
        # (H, W) -> (H, 128): every lane holds the row sum; done on the idle MXU.
        return jnp.dot(x, ones_w, preferred_element_type=jnp.float32)

    @pl.loop(0, c_block)
    def _per_class(cl):
        cls = cb * c_block + cl
        pred = pred_ref[0, cl, :, :].astype(jnp.float32)

        # one-hot of class `cls`; ignored pixels map to the dropped extra class -> 0
        one_hot = jnp.where(jnp.logical_and(gt == cls, keep_b), 1.0, 0.0)
        inv_gt = mask_real(1.0 - one_hot)      # zero outside the logical region
        inv_pred = mask_real(1.0 - pred)

        gt_b = maxpool_same(inv_gt, theta0) - inv_gt
        pred_b = maxpool_same(inv_pred, theta0) - inv_pred
        gt_b_ext = maxpool_same(mask_real(gt_b), theta)
        pred_b_ext = maxpool_same(mask_real(pred_b), theta)

        # Masked sums over kept pixels (== PyTorch's boolean-index-then-sum).
        pk = pred_b * keep
        gk = gt_b * keep
        combined = (rowsum(pk * gt_b_ext) * m_pg + rowsum(pk) * m_p +
                    rowsum(pred_b_ext * gk) * m_qg + rowsum(gk) * m_g)     # (H, 128)
        totals = jnp.dot(ones_h, combined, preferred_element_type=jnp.float32)  # (8, 128)
        out_ref[0, cl] = totals[0:1, :]


def _round_up(x, m):
    return ((x + m - 1) // m) * m


def _vmem_limit_bytes():
    """Per-generation scoped-VMEM request with headroom for compiler temporaries."""
    try:
        cap = pltpu.get_tpu_info().vmem_capacity_bytes
        return int(min(cap * 3 // 4, 96 * 1024 * 1024))
    except Exception:
        return 32 * 1024 * 1024


def _pick_c_block(B, C, H_pad, W_pad, pred_itemsize, vmem_limit, max_block=8):
    """Classes per grid step, sized from the real pred dtype and VMEM budget."""
    plane_f32 = H_pad * W_pad * 4
    # ~24 live f32 planes (hoisted masks + per-class intermediates) + 2x-buffered gt.
    fixed = 26 * plane_f32
    pred_plane = max(1, H_pad * W_pad * pred_itemsize)
    avail = max(vmem_limit - fixed, 0)
    cb = int(max(1, min(max_block, avail // (2 * pred_plane), C)))
    # Keep at least 2 grid steps so multi-TC parts (v7x) have work for both cores.
    while cb > 1 and B * ((C + cb - 1) // cb) < 2:
        cb = (cb + 1) // 2
    return cb


@functools.partial(jax.jit, static_argnames=("theta0", "theta", "ignore_index"))
def boundary_loss(pred, gt, theta0=3, theta=5, ignore_index=-1):
    """Boundary loss forward.  `pred` must be post-softmax (values in [0, 1])."""
    B, C, H, W = pred.shape
    H_pad = _round_up(H, 8)        # sublane-aligned rows
    W_pad = _round_up(W, 128)      # lane-aligned columns
    itemsize = jnp.dtype(pred.dtype).itemsize
    vmem_limit = _vmem_limit_bytes()
    c_block = _pick_c_block(B, C, H_pad, W_pad, itemsize, vmem_limit)
    C_pad = _round_up(C, c_block)

    if (C_pad, H_pad, W_pad) != (C, H, W):
        pred = jnp.pad(pred, ((0, 0), (0, C_pad - C), (0, H_pad - H), (0, W_pad - W)))
    gt_i = gt.astype(jnp.int32)
    if (H_pad, W_pad) != (H, W):
        gt_i = jnp.pad(gt_i, ((0, 0), (0, H_pad - H), (0, W_pad - W)),
                       constant_values=ignore_index)

    kernel = functools.partial(
        _boundary_kernel, theta0=theta0, theta=theta, ignore_index=ignore_index,
        c_block=c_block, h_valid=H, w_valid=W)

    sums = pl.pallas_call(
        kernel,
        out_shape=jax.ShapeDtypeStruct((B, C_pad, 1, 128), jnp.float32),
        grid_spec=pltpu.PrefetchScalarGridSpec(
            num_scalar_prefetch=0,
            grid=(B, C_pad // c_block),   # class axis innermost: gt block re-DMA elided
            in_specs=[
                pl.BlockSpec((1, c_block, H_pad, W_pad), lambda b, cb: (b, cb, 0, 0)),
                pl.BlockSpec((1, H_pad, W_pad), lambda b, cb: (b, 0, 0)),
            ],
            out_specs=pl.BlockSpec((1, c_block, 1, 128), lambda b, cb: (b, cb, 0, 0)),
        ),
        compiler_params=pltpu.CompilerParams(
            dimension_semantics=("parallel", "parallel"),
            vmem_limit_bytes=vmem_limit),
    )(pred, gt_i)

    eps = 1e-7
    s_pg = sums[:, :C, 0, 0]
    s_p = sums[:, :C, 0, 1]
    s_qg = sums[:, :C, 0, 2]
    s_g = sums[:, :C, 0, 3]
    P = s_pg / (s_p + eps)
    R = s_qg / (s_g + eps)
    BF1 = 2.0 * P * R / (P + R + eps)
    return jnp.mean(1.0 - BF1)


def _reference_loss(pred, gt, theta0=3, theta=5, ignore_index=-1):
    """Pure-JAX reference mirroring the PyTorch forward (per-sample mask generalization)."""
    B, C, H, W = pred.shape
    one_hot = (gt[:, None, :, :] == jnp.arange(C)[None, :, None, None]).astype(jnp.float32)
    keep = (gt != ignore_index).astype(jnp.float32)[:, None, :, :]

    def mp(x, k):
        p = k // 2
        return lax.reduce_window(x, -jnp.inf, lax.max, (1, 1, k, k), (1, 1, 1, 1),
                                 [(0, 0), (0, 0), (p, p), (p, p)])

    gt_b = mp(1.0 - one_hot, theta0) - (1.0 - one_hot)
    pred_b = mp(1.0 - pred, theta0) - (1.0 - pred)
    gt_b_ext = mp(gt_b, theta)
    pred_b_ext = mp(pred_b, theta)
    eps = 1e-7
    P = jnp.sum(pred_b * gt_b_ext * keep, axis=(2, 3)) / (jnp.sum(pred_b * keep, axis=(2, 3)) + eps)
    R = jnp.sum(pred_b_ext * gt_b * keep, axis=(2, 3)) / (jnp.sum(gt_b * keep, axis=(2, 3)) + eps)
    BF1 = 2.0 * P * R / (P + R + eps)
    return jnp.mean(1.0 - BF1)


if __name__ == "__main__":
    key = jax.random.PRNGKey(0)
    k1, k2 = jax.random.split(key)
    B, C, H, W = 2, 4, 16, 16

    logits = jax.random.normal(k1, (B, C, H, W), dtype=jnp.float32)
    pred = jax.nn.softmax(logits, axis=1)                       # "after softmax", like PyTorch
    gt = jax.random.randint(k2, (B, H, W), minval=-1, maxval=C, dtype=jnp.int32)  # -1 = ignore

    loss = boundary_loss(pred, gt)
    loss = jax.block_until_ready(loss)

    ref = _reference_loss(pred, gt)
    assert jnp.allclose(loss, ref, atol=1e-5, rtol=1e-5), (loss, ref)

    print("KERNEL_OK")
</pallas_src>

<mosaic_0001>
module attributes {stable_mosaic.version = 11 : i64} {
  func.func @_boundary_kernel(%arg0: i32, %arg1: i32, %arg2: memref<1x4x16x128xf32, #tpu.memory_space<vmem>>, %arg3: memref<1x16x128xi32, #tpu.memory_space<vmem>>, %arg4: memref<1x4x1x128xf32, #tpu.memory_space<vmem>>) attributes {dimension_semantics = [#tpu.dimension_semantics<parallel>, #tpu.dimension_semantics<parallel>], iteration_bounds = array<i64: 2, 1>, scalar_prefetch = 0 : i64, scratch_operands = 0 : i64, tpu.core_type = #tpu.core_type<tc>, window_params = [{transform_indices = @transform_0, window_bounds = array<i64: 1, 4, 16, 128>}, {transform_indices = @transform_1, window_bounds = array<i64: 1, 16, 128>}, {transform_indices = @transform_2, window_bounds = array<i64: 1, 4, 1, 128>}]} {
    %c0 = arith.constant 0 : index
    %c0_0 = arith.constant 0 : index
    %c0_1 = arith.constant 0 : index
    %0 = vector.load %arg3[%c0, %c0_0, %c0_1] : memref<1x16x128xi32, #tpu.memory_space<vmem>>, vector<1x16x128xi32>
    %1 = vector.shape_cast %0 : vector<1x16x128xi32> to vector<16x128xi32>
    %c-1_i32 = arith.constant -1 : i32
    %2 = vector.broadcast %c-1_i32 : i32 to vector<16x128xi32>
    %3 = arith.cmpi ne, %1, %2 : vector<16x128xi32>
    %4 = arith.extui %3 : vector<16x128xi1> to vector<16x128xi32>
    %5 = arith.sitofp %4 : vector<16x128xi32> to vector<16x128xf32>
    %6 = tpu.iota {dimensions = array<i32: 1>} : vector<16x128xi32>
    %7 = tpu.iota {dimensions = array<i32: 0>} : vector<16x128xi32>
    %c16_i32 = arith.constant 16 : i32
    %8 = vector.broadcast %c16_i32 : i32 to vector<16x128xi32>
    %9 = arith.cmpi slt, %7, %8 : vector<16x128xi32>
    %c16_i32_2 = arith.constant 16 : i32
    %10 = vector.broadcast %c16_i32_2 : i32 to vector<16x128xi32>
    %11 = arith.cmpi slt, %6, %10 : vector<16x128xi32>
    %12 = arith.andi %9, %11 : vector<16x128xi1>
    %13 = arith.extui %12 : vector<16x128xi1> to vector<16x128xi32>
    %14 = arith.sitofp %13 : vector<16x128xi32> to vector<16x128xf32>
    %c1_i32 = arith.constant 1 : i32
    %15 = tpu.dynamic_rotate %6 by %c1_i32 dim 1 : vector<16x128xi32>, i32 -> vector<16x128xi32>
    %16 = arith.subi %15, %6 : vector<16x128xi32>
    %17 = math.absi %16 : vector<16x128xi32>
    %c1_i32_3 = arith.constant 1 : i32
    %18 = vector.broadcast %c1_i32_3 : i32 to vector<16x128xi32>
    %19 = arith.cmpi eq, %17, %18 : vector<16x128xi32>
    %20 = arith.extui %19 : vector<16x128xi1> to vector<16x128xi32>
    %21 = arith.sitofp %20 : vector<16x128xi32> to vector<16x128xf32>
    %c127_i32 = arith.constant 127 : i32
    %22 = tpu.dynamic_rotate %6 by %c127_i32 dim 1 : vector<16x128xi32>, i32 -> vector<16x128xi32>
    %23 = arith.subi %22, %6 : vector<16x128xi32>
    %24 = math.absi %23 : vector<16x128xi32>
    %c1_i32_4 = arith.constant 1 : i32
    %25 = vector.broadcast %c1_i32_4 : i32 to vector<16x128xi32>
    %26 = arith.cmpi eq, %24, %25 : vector<16x128xi32>
    %27 = arith.extui %26 : vector<16x128xi1> to vector<16x128xi32>
    %28 = arith.sitofp %27 : vector<16x128xi32> to vector<16x128xf32>
    %c1_i32_5 = arith.constant 1 : i32
    %29 = tpu.dynamic_rotate %7 by %c1_i32_5 dim 0 : vector<16x128xi32>, i32 -> vector<16x128xi32>
    %30 = arith.subi %29, %7 : vector<16x128xi32>
    %31 = math.absi %30 : vector<16x128xi32>
    %c1_i32_6 = arith.constant 1 : i32
    %32 = vector.broadcast %c1_i32_6 : i32 to vector<16x128xi32>
    %33 = arith.cmpi eq, %31, %32 : vector<16x128xi32>
    %34 = arith.extui %33 : vector<16x128xi1> to vector<16x128xi32>
    %35 = arith.sitofp %34 : vector<16x128xi32> to vector<16x128xf32>
    %c15_i32 = arith.constant 15 : i32
    %36 = tpu.dynamic_rotate %7 by %c15_i32 dim 0 : vector<16x128xi32>, i32 -> vector<16x128xi32>
    %37 = arith.subi %36, %7 : vector<16x128xi32>
    %38 = math.absi %37 : vector<16x128xi32>
    %c1_i32_7 = arith.constant 1 : i32
    %39 = vector.broadcast %c1_i32_7 : i32 to vector<16x128xi32>
    %40 = arith.cmpi eq, %38, %39 : vector<16x128xi32>
    %41 = arith.extui %40 : vector<16x128xi1> to vector<16x128xi32>
    %42 = arith.sitofp %41 : vector<16x128xi32> to vector<16x128xf32>
    %c2_i32 = arith.constant 2 : i32
    %43 = tpu.dynamic_rotate %6 by %c2_i32 dim 1 : vector<16x128xi32>, i32 -> vector<16x128xi32>
    %44 = arith.subi %43, %6 : vector<16x128xi32>
    %45 = math.absi %44 : vector<16x128xi32>
    %c2_i32_8 = arith.constant 2 : i32
    %46 = vector.broadcast %c2_i32_8 : i32 to vector<16x128xi32>
    %47 = arith.cmpi eq, %45, %46 : vector<16x128xi32>
    %48 = arith.extui %47 : vector<16x128xi1> to vector<16x128xi32>
    %49 = arith.sitofp %48 : vector<16x128xi32> to vector<16x128xf32>
    %c126_i32 = arith.constant 126 : i32
    %50 = tpu.dynamic_rotate %6 by %c126_i32 dim 1 : vector<16x128xi32>, i32 -> vector<16x128xi32>
    %51 = arith.subi %50, %6 : vector<16x128xi32>
    %52 = math.absi %51 : vector<16x128xi32>
    %c2_i32_9 = arith.constant 2 : i32
    %53 = vector.broadcast %c2_i32_9 : i32 to vector<16x128xi32>
    %54 = arith.cmpi eq, %52, %53 : vector<16x128xi32>
    %55 = arith.extui %54 : vector<16x128xi1> to vector<16x128xi32>
    %56 = arith.sitofp %55 : vector<16x128xi32> to vector<16x128xf32>
    %c2_i32_10 = arith.constant 2 : i32
    %57 = tpu.dynamic_rotate %7 by %c2_i32_10 dim 0 : vector<16x128xi32>, i32 -> vector<16x128xi32>
    %58 = arith.subi %57, %7 : vector<16x128xi32>
    %59 = math.absi %58 : vector<16x128xi32>
    %c2_i32_11 = arith.constant 2 : i32
    %60 = vector.broadcast %c2_i32_11 : i32 to vector<16x128xi32>
    %61 = arith.cmpi eq, %59, %60 : vector<16x128xi32>
    %62 = arith.extui %61 : vector<16x128xi1> to vector<16x128xi32>
    %63 = arith.sitofp %62 : vector<16x128xi32> to vector<16x128xf32>
    %c14_i32 = arith.constant 14 : i32
    %64 = tpu.dynamic_rotate %7 by %c14_i32 dim 0 : vector<16x128xi32>, i32 -> vector<16x128xi32>
    %65 = arith.subi %64, %7 : vector<16x128xi32>
    %66 = math.absi %65 : vector<16x128xi32>
    %c2_i32_12 = arith.constant 2 : i32
    %67 = vector.broadcast %c2_i32_12 : i32 to vector<16x128xi32>
    %68 = arith.cmpi eq, %66, %67 : vector<16x128xi32>
    %69 = arith.extui %68 : vector<16x128xi1> to vector<16x128xi32>
    %70 = arith.sitofp %69 : vector<16x128xi32> to vector<16x128xf32>
    %71 = tpu.iota {dimensions = array<i32: 1>} : vector<1x128xi32>
    %c0_i32 = arith.constant 0 : i32
    %72 = vector.broadcast %c0_i32 : i32 to vector<1x128xi32>
    %73 = arith.cmpi eq, %71, %72 : vector<1x128xi32>
    %74 = arith.extui %73 : vector<1x128xi1> to vector<1x128xi32>
    %75 = arith.sitofp %74 : vector<1x128xi32> to vector<1x128xf32>
    %c1_i32_13 = arith.constant 1 : i32
    %76 = vector.broadcast %c1_i32_13 : i32 to vector<1x128xi32>
    %77 = arith.cmpi eq, %71, %76 : vector<1x128xi32>
    %78 = arith.extui %77 : vector<1x128xi1> to vector<1x128xi32>
    %79 = arith.sitofp %78 : vector<1x128xi32> to vector<1x128xf32>
    %c2_i32_14 = arith.constant 2 : i32
    %80 = vector.broadcast %c2_i32_14 : i32 to vector<1x128xi32>
    %81 = arith.cmpi eq, %71, %80 : vector<1x128xi32>
    %82 = arith.extui %81 : vector<1x128xi1> to vector<1x128xi32>
    %83 = arith.sitofp %82 : vector<1x128xi32> to vector<1x128xf32>
    %c3_i32 = arith.constant 3 : i32
    %84 = vector.broadcast %c3_i32 : i32 to vector<1x128xi32>
    %85 = arith.cmpi eq, %71, %84 : vector<1x128xi32>
    %86 = arith.extui %85 : vector<1x128xi1> to vector<1x128xi32>
    %87 = arith.sitofp %86 : vector<1x128xi32> to vector<1x128xf32>
    %cst = arith.constant 1.000000e+00 : f32
    %88 = vector.broadcast %cst : f32 to vector<128x128xf32>
    %cst_15 = arith.constant 1.000000e+00 : f32
    %89 = vector.broadcast %cst_15 : f32 to vector<8x16xf32>
    %c0_i32_16 = arith.constant 0 : i32
    %c4_i32 = arith.constant 4 : i32
    %90 = arith.addi %c0_i32_16, %c4_i32 : i32
    %c1_i32_17 = arith.constant 1 : i32
    scf.for %arg5 = %c0_i32_16 to %90 step %c1_i32_17  : i32 {
      %c1_i32_19 = arith.constant 1 : i32
      %91 = arith.muli %arg5, %c1_i32_19 : i32
      %c0_i32_20 = arith.constant 0 : i32
      %92 = arith.addi %c0_i32_20, %91 : i32
      %c4_i32_21 = arith.constant 4 : i32
      %93 = arith.muli %arg1, %c4_i32_21 : i32
      %94 = arith.addi %93, %92 : i32
      %c0_22 = arith.constant 0 : index
      %95 = arith.index_cast %92 : i32 to index
      %c0_23 = arith.constant 0 : index
      %c0_24 = arith.constant 0 : index
      %96 = vector.load %arg2[%c0_22, %95, %c0_23, %c0_24] : memref<1x4x16x128xf32, #tpu.memory_space<vmem>>, vector<1x1x16x128xf32>
      %97 = vector.shape_cast %96 : vector<1x1x16x128xf32> to vector<16x128xf32>
      %98 = vector.broadcast %94 : i32 to vector<16x128xi32>
      %99 = arith.cmpi eq, %1, %98 : vector<16x128xi32>
      %100 = arith.andi %99, %3 : vector<16x128xi1>
      %cst_25 = arith.constant 1.000000e+00 : f32
      %cst_26 = arith.constant 0.000000e+00 : f32
      %101 = vector.broadcast %cst_25 : f32 to vector<16x128xf32>
      %102 = vector.broadcast %cst_26 : f32 to vector<16x128xf32>
      %103 = arith.select %100, %101, %102 : vector<16x128xi1>, vector<16x128xf32>
      %cst_27 = arith.constant 1.000000e+00 : f32
      %104 = vector.broadcast %cst_27 : f32 to vector<16x128xf32>
      %105 = arith.subf %104, %103 : vector<16x128xf32>
      %106 = arith.mulf %105, %14 : vector<16x128xf32>
      %cst_28 = arith.constant 1.000000e+00 : f32
      %107 = vector.broadcast %cst_28 : f32 to vector<16x128xf32>
      %108 = arith.subf %107, %97 : vector<16x128xf32>
      %109 = arith.mulf %108, %14 : vector<16x128xf32>
      %c1_i32_29 = arith.constant 1 : i32
      %110 = tpu.dynamic_rotate %106 by %c1_i32_29 dim 1 : vector<16x128xf32>, i32 -> vector<16x128xf32>
      %111 = arith.mulf %110, %21 : vector<16x128xf32>
      %112 = arith.maximumf %106, %111 : vector<16x128xf32>
      %c127_i32_30 = arith.constant 127 : i32
      %113 = tpu.dynamic_rotate %106 by %c127_i32_30 dim 1 : vector<16x128xf32>, i32 -> vector<16x128xf32>
      %114 = arith.mulf %113, %28 : vector<16x128xf32>
      %115 = arith.maximumf %112, %114 : vector<16x128xf32>
      %c1_i32_31 = arith.constant 1 : i32
      %116 = tpu.dynamic_rotate %115 by %c1_i32_31 dim 0 : vector<16x128xf32>, i32 -> vector<16x128xf32>
      %117 = arith.mulf %116, %35 : vector<16x128xf32>
      %118 = arith.maximumf %115, %117 : vector<16x128xf32>
      %c15_i32_32 = arith.constant 15 : i32
      %119 = tpu.dynamic_rotate %115 by %c15_i32_32 dim 0 : vector<16x128xf32>, i32 -> vector<16x128xf32>
      %120 = arith.mulf %119, %42 : vector<16x128xf32>
      %121 = arith.maximumf %118, %120 : vector<16x128xf32>
      %122 = arith.subf %121, %106 : vector<16x128xf32>
      %c1_i32_33 = arith.constant 1 : i32
      %123 = tpu.dynamic_rotate %109 by %c1_i32_33 dim 1 : vector<16x128xf32>, i32 -> vector<16x128xf32>
      %124 = arith.mulf %123, %21 : vector<16x128xf32>
      %125 = arith.maximumf %109, %124 : vector<16x128xf32>
      %c127_i32_34 = arith.constant 127 : i32
      %126 = tpu.dynamic_rotate %109 by %c127_i32_34 dim 1 : vector<16x128xf32>, i32 -> vector<16x128xf32>
      %127 = arith.mulf %126, %28 : vector<16x128xf32>
      %128 = arith.maximumf %125, %127 : vector<16x128xf32>
      %c1_i32_35 = arith.constant 1 : i32
      %129 = tpu.dynamic_rotate %128 by %c1_i32_35 dim 0 : vector<16x128xf32>, i32 -> vector<16x128xf32>
      %130 = arith.mulf %129, %35 : vector<16x128xf32>
      %131 = arith.maximumf %128, %130 : vector<16x128xf32>
      %c15_i32_36 = arith.constant 15 : i32
      %132 = tpu.dynamic_rotate %128 by %c15_i32_36 dim 0 : vector<16x128xf32>, i32 -> vector<16x128xf32>
      %133 = arith.mulf %132, %42 : vector<16x128xf32>
      %134 = arith.maximumf %131, %133 : vector<16x128xf32>
      %135 = arith.subf %134, %109 : vector<16x128xf32>
      %136 = arith.mulf %122, %14 : vector<16x128xf32>
      %c1_i32_37 = arith.constant 1 : i32
      %137 = tpu.dynamic_rotate %136 by %c1_i32_37 dim 1 : vector<16x128xf32>, i32 -> vector<16x128xf32>
      %138 = arith.mulf %137, %21 : vector<16x128xf32>
      %139 = arith.maximumf %136, %138 : vector<16x128xf32>
      %c127_i32_38 = arith.constant 127 : i32
      %140 = tpu.dynamic_rotate %136 by %c127_i32_38 dim 1 : vector<16x128xf32>, i32 -> vector<16x128xf32>
      %141 = arith.mulf %140, %28 : vector<16x128xf32>
      %142 = arith.maximumf %139, %141 : vector<16x128xf32>
      %c2_i32_39 = arith.constant 2 : i32
      %143 = tpu.dynamic_rotate %136 by %c2_i32_39 dim 1 : vector<16x128xf32>, i32 -> vector<16x128xf32>
      %144 = arith.mulf %143, %49 : vector<16x128xf32>
      %145 = arith.maximumf %142, %144 : vector<16x128xf32>
      %c126_i32_40 = arith.constant 126 : i32
      %146 = tpu.dynamic_rotate %136 by %c126_i32_40 dim 1 : vector<16x128xf32>, i32 -> vector<16x128xf32>
      %147 = arith.mulf %146, %56 : vector<16x128xf32>
      %148 = arith.maximumf %145, %147 : vector<16x128xf32>
      %c1_i32_41 = arith.constant 1 : i32
      %149 = tpu.dynamic_rotate %148 by %c1_i32_41 dim 0 : vector<16x128xf32>, i32 -> vector<16x128xf32>
      %150 = arith.mulf %149, %35 : vector<16x128xf32>
      %151 = arith.maximumf %148, %150 : vector<16x128xf32>
      %c15_i32_42 = arith.constant 15 : i32
      %152 = tpu.dynamic_rotate %148 by %c15_i32_42 dim 0 : vector<16x128xf32>, i32 -> vector<16x128xf32>
      %153 = arith.mulf %152, %42 : vector<16x128xf32>
      %154 = arith.maximumf %151, %153 : vector<16x128xf32>
      %c2_i32_43 = arith.constant 2 : i32
      %155 = tpu.dynamic_rotate %148 by %c2_i32_43 dim 0 : vector<16x128xf32>, i32 -> vector<16x128xf32>
      %156 = arith.mulf %155, %63 : vector<16x128xf32>
      %157 = arith.maximumf %154, %156 : vector<16x128xf32>
      %c14_i32_44 = arith.constant 14 : i32
      %158 = tpu.dynamic_rotate %148 by %c14_i32_44 dim 0 : vector<16x128xf32>, i32 -> vector<16x128xf32>
      %159 = arith.mulf %158, %70 : vector<16x128xf32>
      %160 = arith.maximumf %157, %159 : vector<16x128xf32>
      %161 = arith.mulf %135, %14 : vector<16x128xf32>
      %c1_i32_45 = arith.constant 1 : i32
      %162 = tpu.dynamic_rotate %161 by %c1_i32_45 dim 1 : vector<16x128xf32>, i32 -> vector<16x128xf32>
      %163 = arith.mulf %162, %21 : vector<16x128xf32>
      %164 = arith.maximumf %161, %163 : vector<16x128xf32>
      %c127_i32_46 = arith.constant 127 : i32
      %165 = tpu.dynamic_rotate %161 by %c127_i32_46 dim 1 : vector<16x128xf32>, i32 -> vector<16x128xf32>
      %166 = arith.mulf %165, %28 : vector<16x128xf32>
      %167 = arith.maximumf %164, %166 : vector<16x128xf32>
      %c2_i32_47 = arith.constant 2 : i32
      %168 = tpu.dynamic_rotate %161 by %c2_i32_47 dim 1 : vector<16x128xf32>, i32 -> vector<16x128xf32>
      %169 = arith.mulf %168, %49 : vector<16x128xf32>
      %170 = arith.maximumf %167, %169 : vector<16x128xf32>
      %c126_i32_48 = arith.constant 126 : i32
      %171 = tpu.dynamic_rotate %161 by %c126_i32_48 dim 1 : vector<16x128xf32>, i32 -> vector<16x128xf32>
      %172 = arith.mulf %171, %56 : vector<16x128xf32>
      %173 = arith.maximumf %170, %172 : vector<16x128xf32>
      %c1_i32_49 = arith.constant 1 : i32
      %174 = tpu.dynamic_rotate %173 by %c1_i32_49 dim 0 : vector<16x128xf32>, i32 -> vector<16x128xf32>
      %175 = arith.mulf %174, %35 : vector<16x128xf32>
      %176 = arith.maximumf %173, %175 : vector<16x128xf32>
      %c15_i32_50 = arith.constant 15 : i32
      %177 = tpu.dynamic_rotate %173 by %c15_i32_50 dim 0 : vector<16x128xf32>, i32 -> vector<16x128xf32>
      %178 = arith.mulf %177, %42 : vector<16x128xf32>
      %179 = arith.maximumf %176, %178 : vector<16x128xf32>
      %c2_i32_51 = arith.constant 2 : i32
      %180 = tpu.dynamic_rotate %173 by %c2_i32_51 dim 0 : vector<16x128xf32>, i32 -> vector<16x128xf32>
      %181 = arith.mulf %180, %63 : vector<16x128xf32>
      %182 = arith.maximumf %179, %181 : vector<16x128xf32>
      %c14_i32_52 = arith.constant 14 : i32
      %183 = tpu.dynamic_rotate %173 by %c14_i32_52 dim 0 : vector<16x128xf32>, i32 -> vector<16x128xf32>
      %184 = arith.mulf %183, %70 : vector<16x128xf32>
      %185 = arith.maximumf %182, %184 : vector<16x128xf32>
      %186 = arith.mulf %135, %5 : vector<16x128xf32>
      %187 = arith.mulf %122, %5 : vector<16x128xf32>
      %188 = arith.mulf %186, %160 : vector<16x128xf32>
      %cst_53 = arith.constant dense<0.000000e+00> : vector<16x128xf32>
      %189 = tpu.matmul %188, %88, %cst_53 {dimension_numbers = #tpu.dot_dimension_numbers<[1], [0], [0], [1], [0, 0, 1, 1], [], []>} : vector<16x128xf32>, vector<128x128xf32>, vector<16x128xf32> -> vector<16x128xf32>
      %190 = vector.broadcast %75 : vector<1x128xf32> to vector<16x128xf32>
      %191 = arith.mulf %189, %190 : vector<16x128xf32>
      %cst_54 = arith.constant dense<0.000000e+00> : vector<16x128xf32>
      %192 = tpu.matmul %186, %88, %cst_54 {dimension_numbers = #tpu.dot_dimension_numbers<[1], [0], [0], [1], [0, 0, 1, 1], [], []>} : vector<16x128xf32>, vector<128x128xf32>, vector<16x128xf32> -> vector<16x128xf32>
      %193 = vector.broadcast %79 : vector<1x128xf32> to vector<16x128xf32>
      %194 = arith.mulf %192, %193 : vector<16x128xf32>
      %195 = arith.addf %191, %194 : vector<16x128xf32>
      %196 = arith.mulf %185, %187 : vector<16x128xf32>
      %cst_55 = arith.constant dense<0.000000e+00> : vector<16x128xf32>
      %197 = tpu.matmul %196, %88, %cst_55 {dimension_numbers = #tpu.dot_dimension_numbers<[1], [0], [0], [1], [0, 0, 1, 1], [], []>} : vector<16x128xf32>, vector<128x128xf32>, vector<16x128xf32> -> vector<16x128xf32>
      %198 = vector.broadcast %83 : vector<1x128xf32> to vector<16x128xf32>
      %199 = arith.mulf %197, %198 : vector<16x128xf32>
      %200 = arith.addf %195, %199 : vector<16x128xf32>
      %cst_56 = arith.constant dense<0.000000e+00> : vector<16x128xf32>
      %201 = tpu.matmul %187, %88, %cst_56 {dimension_numbers = #tpu.dot_dimension_numbers<[1], [0], [0], [1], [0, 0, 1, 1], [], []>} : vector<16x128xf32>, vector<128x128xf32>, vector<16x128xf32> -> vector<16x128xf32>
      %202 = vector.broadcast %87 : vector<1x128xf32> to vector<16x128xf32>
      %203 = arith.mulf %201, %202 : vector<16x128xf32>
      %204 = arith.addf %200, %203 : vector<16x128xf32>
      %cst_57 = arith.constant dense<0.000000e+00> : vector<8x128xf32>
      %205 = tpu.matmul %89, %204, %cst_57 {dimension_numbers = #tpu.dot_dimension_numbers<[1], [0], [0], [1], [0, 0, 1, 1], [], []>} : vector<8x16xf32>, vector<16x128xf32>, vector<8x128xf32> -> vector<8x128xf32>
      %206 = vector.extract_strided_slice %205 {offsets = [0, 0], sizes = [1, 128], strides = [1, 1]} : vector<8x128xf32> to vector<1x128xf32>
      %c0_58 = arith.constant 0 : index
      %207 = arith.index_cast %92 : i32 to index
      %c0_59 = arith.constant 0 : index
      %c0_60 = arith.constant 0 : index
      %208 = vector.load %arg4[%c0_58, %207, %c0_59, %c0_60] : memref<1x4x1x128xf32, #tpu.memory_space<vmem>>, vector<1x1x1x128xf32>
      %209 = vector.shape_cast %208 : vector<1x1x1x128xf32> to vector<1x128xf32>
      %210 = vector.shape_cast %206 : vector<1x128xf32> to vector<1x1x1x128xf32>
      tpu.vector_store %arg4[%c0_58, %207, %c0_59, %c0_60], %210 {strides = array<i32>} : memref<1x4x1x128xf32, #tpu.memory_space<vmem>>, vector<1x1x1x128xf32>,
    }
    %c4_i32_18 = arith.constant 4 : i32
    return
  }
  func.func @transform_0(%arg0: i32, %arg1: i32) -> (i32, i32, i32, i32) {
    %c0_i32 = arith.constant 0 : i32
    %c0_i32_0 = arith.constant 0 : i32
    %c0_i32_1 = arith.constant 0 : i32
    return %arg0, %arg1, %c0_i32, %c0_i32_0 : i32, i32, i32, i32
  }
  func.func @transform_1(%arg0: i32, %arg1: i32) -> (i32, i32, i32) {
    %c0_i32 = arith.constant 0 : i32
    %c0_i32_0 = arith.constant 0 : i32
    %c0_i32_1 = arith.constant 0 : i32
    return %arg0, %c0_i32, %c0_i32_0 : i32, i32, i32
  }
  func.func @transform_2(%arg0: i32, %arg1: i32) -> (i32, i32, i32, i32) {
    %c0_i32 = arith.constant 0 : i32
    %c0_i32_0 = arith.constant 0 : i32
    %c0_i32_1 = arith.constant 0 : i32
    return %arg0, %arg1, %c0_i32, %c0_i32_0 : i32, i32, i32, i32
  }
}

</mosaic_0001>

<bundles_post_ra>
// kernel: boundary_loss.1
= control target key start
LH: loop header
LB: loop body
LE: loop exit
PB: predicated region body
PF: predicated region fallthrough
CT: control target
= control target key end

     0   :  { %s1452_s9 = smov 0   ;;  %s1454_s10 = smov 0   ;;  %s1966_s0 = inlined_call_operand.vmem [shape: f32[2,4,16,128], index: 0, kind: input, shape index: {}]   ;;  %s1967_s1 = inlined_call_operand.vmem [shape: s32[2,16,128], index: 1, kind: input, shape index: {}]   ;;  %s1968_s2 = inlined_call_operand.vmem [shape: f32[2,4,1,128], index: 2, kind: output, shape index: {}]  }
   0x1   :  { %s1456_s11 = smov 0  }
   0x2 LB: > { %s24_s12 = sadd.s32 1, %s1415_s10  ;;  %p1083_p0 = scmp.ge.s32.totalorder %s1419_s11, 1  ;;  %s1419_s11 = sphi %s1456_s11, %s12_s11   ;;  %s1415_s10 = sphi %s1454_s10, %s1989_s10   ;;  %s1411_s9 = sphi %s1452_s9, %s1988_s9  }
   0x3   : > { %p26_p1 = scmp.ge.s32.totalorder %s24_s12, 2  ;;  %p144_p2 = scmp.lt.s32.totalorder %s1419_s11, 3 }
   0x5   : > { %s1991_s12 = smov (%p26_p1, %s24_s12), 0  ;;  %p145_p3 = pnand %p1083_p0, %p144_p2 }
   0x6   : > { %p180_p4 = scmp.lt.s32.totalorder (!%p145_p3), %s1411_s9, 1  ;;  %s1425_s13 = smov (!%p145_p3), 2  }
   0x7   : > { %148 = sbr.rel (%p145_p3) target bundleno = 869 (0x365), region = 28  ;;  %s1426_s14 = smov (!%p145_p3), 1  }
   0x8   : > { %s1427_s19 = smov (!%p145_p3), 126   ;;  %s1428_s22 = smov (!%p145_p3), 127  }
   0x9   : > { %s1596_s29 = smov (!%p145_p3), 0  }
   0xc   : > { %v212_v0 = vlaneseq  ;;  %s1993_s9 = smov (!%p180_p4, %s1411_s9), 1  ;;  %v1429_v46 = vmov 0.0  }
   0xd   : > { %s1125_s15 = sshll.u32 %s1993_s9, 6  ;;  %s1126_s20 = sshll.u32 %s1993_s9, 4 }
   0xe   : > { %v1470_v1 = vand.u32 127, %v212_v0  ;;  %v1472_v2 = vshrl.u32 %v212_v0, 7  ;;  %s1491_s18 = scalar_lea.vmem %s1966_s0, %s1125_s15  ;;  %s1088_s21 = sshll.u32 %s1993_s9, 2 }
   0xf   : > { %s1511_s25 = scalar_lea.vmem %s1968_s2, %s1088_s21  ;;  %s194_s28 = scalar_lea.vmem %s1967_s1, %s1126_s20 }
  0x10   : > { %v216_v3 = vadd.s32 8, %v1472_v2  ;;  %v244_v4 = vrot.slane %v1472_v2, 7  ;;  %v263_v5 = vrot.slane %v1472_v2, 1  ;;  %282 = vrot.lane.b32.xlu1 %v1470_v1, %s1425_s13  ;;  %226 = vrot.lane.b32.xlu0 %v1470_v1, %s1426_s14  ;;  %vm246_vm0 = vcmp.lt.s32.totalorder %v1472_v2, 1  ;;  %v1528_v40 = vld [vmem:[%s194_s28] sm:$0xff]  ;;  %v1530_v41 = vld [vmem:[%s194_s28 + $0x8] sm:$0xff] }
  0x11   : > { %vm1971_vm1 = vcmp.lt.s32.totalorder %v1472_v2, 7  ;;  %v300_v6 = vrot.slane %v1472_v2, 6  ;;  %v319_v7 = vrot.slane %v1472_v2, 2  ;;  %vm1970_vm2 = vcmp.lt.s32.totalorder %v1472_v2, 2 }
  0x12   : > { %v245_v8 = vrot.slane %v216_v3, 7  ;;  %v264_v9 = vrot.slane %v216_v3, 1  ;;  %v301_v10 = vrot.slane %v216_v3, 6  ;;  %v320_v11 = vrot.slane %v216_v3, 2 }
  0x13   : > { %vm1969_vm3 = vcmp.lt.s32.totalorder %v1472_v2, 6  ;;  %vm219_vm4 = vcmp.lt.s32.totalorder %v1470_v1, 16  ;;  %vm338_vm5 = vcmp.eq.s32.totalorder %v1470_v1, 0  ;;  %vm341_vm6 = vcmp.eq.s32.totalorder %v1470_v1, 1 }
  0x14   : > { %v247_v12 = vsel %vm246_vm0, %v244_v4, %v245_v8  ;;  %v248_v13 = vsel %vm246_vm0, %v245_v8, %v244_v4  ;;  %v266_v14 = vsel %vm1971_vm1, %v263_v5, %v264_v9  ;;  %v267_v15 = vsel %vm1971_vm1, %v264_v9, %v263_v5  ;;  %291 = vrot.lane.b32.xlu1 %v1470_v1, %s1427_s19 }
  0x15   : > { %v249_v16 = vsub.s32 %v248_v13, %v1472_v2  ;;  %v250_v17 = vsub.s32 %v247_v12, %v216_v3  ;;  %v268_v18 = vsub.s32 %v266_v14, %v1472_v2  ;;  %v269_v19 = vsub.s32 %v267_v15, %v216_v3  ;;  %235 = vrot.lane.b32.xlu0 %v1470_v1, %s1428_s22 }
  0x16   : > { %v303_v20 = vsel %vm1970_vm2, %v300_v6, %v301_v10  ;;  %v304_v21 = vsel %vm1970_vm2, %v301_v10, %v300_v6  ;;  %v322_v22 = vsel %vm1969_vm3, %v319_v7, %v320_v11  ;;  %v323_v23 = vsel %vm1969_vm3, %v320_v11, %v319_v7 }
  0x17   : > { %v252_v24 = vsub.s32 0, %v249_v16  ;;  %v255_v25 = vsub.s32 0, %v250_v17  ;;  %v271_v26 = vsub.s32 0, %v268_v18  ;;  %v274_v27 = vsub.s32 0, %v269_v19 }
  0x18   : > { %v305_v28 = vsub.s32 %v304_v21, %v1472_v2  ;;  %v306_v29 = vsub.s32 %v303_v20, %v216_v3  ;;  %v324_v30 = vsub.s32 %v322_v22, %v1472_v2  ;;  %v325_v31 = vsub.s32 %v323_v23, %v216_v3 }
  0x19   : > { %v1097_v32 = vmin.u32 %v252_v24, %v249_v16  ;;  %v1098_v33 = vmin.u32 %v255_v25, %v250_v17  ;;  %v1101_v34 = vmin.u32 %v271_v26, %v268_v18  ;;  %v1102_v35 = vmin.u32 %v274_v27, %v269_v19 }
  0x1a   : > { %v308_v36 = vsub.s32 0, %v305_v28  ;;  %v311_v37 = vsub.s32 0, %v306_v29  ;;  %v327_v38 = vsub.s32 0, %v324_v30  ;;  %v330_v39 = vsub.s32 0, %v325_v31 }
  0x1b   : > { %vm257_vm7 = vcmp.eq.s32.totalorder %v1097_v32, 1  ;;  %vm258_vm8 = vcmp.eq.s32.totalorder %v1098_v33, 1  ;;  %vm276_vm9 = vcmp.eq.s32.totalorder %v1101_v34, 1  ;;  %vm277_vm10 = vcmp.eq.s32.totalorder %v1102_v35, 1 }
  0x1c   : > { %v1109_v42 = vmin.u32 %v308_v36, %v305_v28  ;;  %v1110_v43 = vmin.u32 %v311_v37, %v306_v29  ;;  %v1113_v44 = vmin.u32 %v327_v38, %v324_v30  ;;  %v1114_v45 = vmin.u32 %v330_v39, %v325_v31 }
  0x1d   : > { %vm344_vm11 = vcmp.eq.s32.totalorder %v1470_v1, 2  ;;  %vm347_vm12 = vcmp.eq.s32.totalorder %v1470_v1, 3  ;;  %vm206_vm13 = vcmp.ne.s32.totalorder %v1528_v40, 4294967295  ;;  %vm207_vm14 = vcmp.ne.s32.totalorder %v1530_v41, 4294967295 }
  0x1e   : > { %vm313_vm15 = vcmp.eq.s32.totalorder %v1109_v42, 2  ;;  %vm314_vm3 = vcmp.eq.s32.totalorder %v1110_v43, 2  ;;  %vm332_vm2 = vcmp.eq.s32.totalorder %v1113_v44, 2  ;;  %vm333_vm1 = vcmp.eq.s32.totalorder %v1114_v45, 2 }
  0x1f   : > { %v1538_v47 = vsel %vm206_vm13, 1.0, %v1429_v46  ;;  %v1542_v48 = vsel %vm207_vm14, 1.0, %v1429_v46  ;;  %v1546_v49 = vsel %vm219_vm4, 1.0, %v1429_v46  ;;  %v1549_v50 = vsel %vm257_vm7, 1.0, %v1429_v46 }
  0x20   : > { %v1552_v51 = vsel %vm258_vm8, 1.0, %v1429_v46  ;;  %v1555_v52 = vsel %vm276_vm9, 1.0, %v1429_v46  ;;  %v1558_v53 = vsel %vm277_vm10, 1.0, %v1429_v46  ;;  %v1560_v54 = vsel %vm313_vm15, 1.0, %v1429_v46 }
  0x21   : > { %v1562_v55 = vsel %vm314_vm3, 1.0, %v1429_v46  ;;  %v1564_v56 = vsel %vm332_vm2, 1.0, %v1429_v46  ;;  %v1566_v57 = vsel %vm333_vm1, 1.0, %v1429_v46  ;;  %v1570_v58 = vsel %vm338_vm5, 1.0, %v1429_v46 }
  0x22   : > { %v1574_v59 = vsel %vm341_vm6, 1.0, %v1429_v46  ;;  %v1578_v60 = vsel %vm344_vm11, 1.0, %v1429_v46  ;;  %v1582_v61 = vsel %vm347_vm12, 1.0, %v1429_v46 }
  0x82   : > { %v283_v62 = vpop.permute.xlu1 %282  ;;  %v227_v63 = vpop.permute.xlu0 %226 }
  0x83   : > { %v284_v0 = vsub.s32 %v283_v62, %v1470_v1  ;;  %v228_v3 = vsub.s32 %v227_v63, %v1470_v1 }
  0x85   : > { %v286_v4 = vsub.s32 0, %v284_v0  ;;  %v230_v5 = vsub.s32 0, %v228_v3 }
  0x86   : > { %v292_v6 = vpop.permute.xlu1 %291 }
  0x87   : > { %v1105_v7 = vmin.u32 %v286_v4, %v284_v0  ;;  %v1093_v8 = vmin.u32 %v230_v5, %v228_v3  ;;  %v293_v9 = vsub.s32 %v292_v6, %v1470_v1  ;;  %v236_v10 = vpop.permute.xlu0 %235 }
  0x88   : > { %v237_v11 = vsub.s32 %v236_v10, %v1470_v1 }
  0x89   : > { %vm288_vm1 = vcmp.eq.s32.totalorder %v1105_v7, 2  ;;  %vm232_vm2 = vcmp.eq.s32.totalorder %v1093_v8, 1  ;;  %v295_v12 = vsub.s32 0, %v293_v9 }
  0x8a   : > { %v1588_v13 = vsel %vm288_vm1, 1.0, %v1429_v46  ;;  %v1590_v14 = vsel %vm232_vm2, 1.0, %v1429_v46  ;;  %v239_v15 = vsub.s32 0, %v237_v11 }
  0x8b   : > { %v1107_v16 = vmin.u32 %v295_v12, %v293_v9 }
  0x8c   : > { %v1095_v17 = vmin.u32 %v239_v15, %v237_v11 }
  0x8d   : > { %vm297_vm3 = vcmp.eq.s32.totalorder %v1107_v16, 2 }
  0x8e   : > { %v1592_v18 = vsel %vm297_vm3, 1.0, %v1429_v46  ;;  %vm241_vm4 = vcmp.eq.s32.totalorder %v1095_v17, 1 }
  0x8f   : > { %v1594_v19 = vsel %vm241_vm4, 1.0, %v1429_v46 }
  0x90 LB: >> { %v1430_v1 = vmov 1.0   ;;  %v362_v20 = vstv %s1423_s29  ;;  %s1121_s30 = sshll.u32 %s1423_s29, 4  ;;  %v1431_v21 = vmov 0.0   ;;  %s1432_s4 = smov 127   ;;  %vm1972_vm9 = vcmp.lt.s32.totalorder %v1472_v2, 7  ;;  %s1423_s29 = sphi %s1596_s29, %s355_s29  }
  0x91   : >> { %1237 = vmatprep.subr.mxu1 %v1430_v1  ;;  %1202 = vmatprep.subr.mxu0 %v1430_v1  ;;  %vm363_vm5 = vcmp.eq.s32.totalorder %v1528_v40, %v362_v20  ;;  %vm364_vm6 = vcmp.eq.s32.totalorder %v1530_v41, %v362_v20  ;;  %s359_s3 = scalar_lea.vmem %s1491_s18, %s1121_s30  ;;  %s1433_s5 = smov 1   ;;  %vm1973_vm10 = vmmov %vm1972_vm9  ;;  %vm1977_vm1 = vcmp.lt.s32.totalorder %v1472_v2, 2  ;;  %vm1979_vm3 = vcmp.lt.s32.totalorder %v1472_v2, 6 }
  0x92   : >> { %1238 = vmatpush3.msra.mxu1 %v1430_v1  ;;  %1203 = vmatpush3.msra.mxu0 %v1430_v1  ;;  %vm365_vm7 = vmand %vm363_vm5, %vm206_vm13  ;;  %v361_v26 = vld [vmem:[%s359_s3 + $0x8] sm:$0xff]  ;;  %v360_v27 = vld [vmem:[%s359_s3] sm:$0xff]  ;;  %s1434_s6 = smov 2   ;;  %s1435_s7 = smov 126  }
  0x93   : >> { %1239 = vmatprep.subr.mxu1 %v1430_v1  ;;  %1204 = vmatprep.subr.mxu0 %v1430_v1  ;;  %v367_v22 = vsel %vm365_vm7, 1.0, %v1431_v21  ;;  %vm366_vm8 = vmand %vm364_vm6, %vm207_vm14  ;;  %v374_v30 = vsub.f32 1.0, %v361_v26  ;;  %v373_v31 = vsub.f32 1.0, %v360_v27  ;;  %s973_s8 = scalar_lea.vmem %s1511_s25, %s1423_s29  ;;  %s355_s29 = sadd.s32 1, %s1423_s29  }
  0x94   : >> { %1240 = vmatpush3.msra.mxu1 %v1430_v1  ;;  %1205 = vmatpush3.msra.mxu0 %v1430_v1  ;;  %v369_v23 = vsub.f32 1.0, %v367_v22  ;;  %v368_v24 = vsel %vm366_vm8, 1.0, %v1431_v21  ;;  %vm1974_vm11 = vmmov %vm1972_vm9  ;;  %p352_p5 = scmp.ge.s32.totalorder %s355_s29, 4  }
  0x95   : >> { %1241 = vmatprep.subr.mxu1 %v1430_v1  ;;  %1206 = vmatprep.subr.mxu0 %v1430_v1  ;;  %v370_v25 = vsub.f32 1.0, %v368_v24  ;;  %v1651_v32 = vmul.f32 %v1546_v49, %v374_v30  ;;  %v1654_v33 = vmul.f32 %v1546_v49, %v373_v31  ;;  %vm1975_vm12 = vmmov %vm1972_vm9 }
  0x96   : >> { %1242 = vmatpush3.msra.mxu1 %v1430_v1  ;;  %1207 = vmatpush3.msra.mxu0 %v1430_v1  ;;  %v1627_v28 = vmul.f32 %v1546_v49, %v369_v23  ;;  %vm1976_vm15 = vmmov %vm1972_vm9 }
  0x97   : >> { %1243 = vmatprep.subr.mxu1 %v1430_v1  ;;  %1208 = vmatprep.subr.mxu0 %v1430_v1  ;;  %v1638_v29 = vmul.f32 %v1546_v49, %v370_v25  ;;  %vm1978_vm2 = vmmov %vm1972_vm9 }
  0x98   : >> { %1244 = vmatpush3.msra.mxu1 %v1430_v1  ;;  %1209 = vmatpush3.msra.mxu0 %v1430_v1  ;;  %vm1980_vm4 = vmmov %vm1977_vm1 }
  0x99   : >> { %1245 = vmatprep.subr.mxu1 %v1430_v1  ;;  %1210 = vmatprep.subr.mxu0 %v1430_v1  ;;  %vm1981_vm5 = vmmov %vm1979_vm3 }
  0x9a   : >> { %385 = vrot.lane.b32.xlu1 %v1627_v28, %s1432_s4  ;;  %377 = vrot.lane.b32.xlu0 %v1627_v28, %s1433_s5  ;;  %vm1982_vm6 = vmmov %vm1978_vm2 }
  0x9b   : >> { %1246 = vmatpush3.msra.mxu1 %v1430_v1  ;;  %1211 = vmatpush3.msra.mxu0 %v1430_v1  ;;  %vm1983_vm7 = vmmov %vm1977_vm1 }
  0x9c   : >> { %1247 = vmatprep.subr.mxu1 %v1430_v1  ;;  %1212 = vmatprep.subr.mxu0 %v1430_v1  ;;  %vm1984_vm8 = vmmov %vm1979_vm3 }
  0x9d   : >> { %1248 = vmatpush3.msra.mxu1 %v1430_v1  ;;  %1213 = vmatpush3.msra.mxu0 %v1430_v1 }
  0x9e   : >> { %387 = vrot.lane.b32.xlu1 %v1638_v29, %s1432_s4  ;;  %379 = vrot.lane.b32.xlu0 %v1638_v29, %s1433_s5 }
  0x9f   : >> { %1249 = vmatprep.subr.mxu1 %v1430_v1  ;;  %1214 = vmatprep.subr.mxu0 %v1430_v1 }
  0xa0   : >> { %1250 = vmatpush3.msra.mxu1 %v1430_v1  ;;  %1215 = vmatpush3.msra.mxu0 %v1430_v1 }
  0xa1   : >> { %1251 = vmatprep.subr.mxu1 %v1430_v1  ;;  %1216 = vmatprep.subr.mxu0 %v1430_v1 }
  0xa2   : >> { %413 = vrot.lane.b32.xlu1 %v1651_v32, %s1433_s5  ;;  %411 = vrot.lane.b32.xlu0 %v1654_v33, %s1433_s5 }
  0xa3   : >> { %1252 = vmatpush3.msra.mxu1 %v1430_v1  ;;  %1217 = vmatpush3.msra.mxu0 %v1430_v1 }
  0xa4   : >> { %1253 = vmatprep.subr.mxu1 %v1430_v1  ;;  %1218 = vmatprep.subr.mxu0 %v1430_v1 }
  0xa5   : >> { %1254 = vmatpush3.msra.mxu1 %v1430_v1  ;;  %1219 = vmatpush3.msra.mxu0 %v1430_v1 }
  0xa6   : >> { %421 = vrot.lane.b32.xlu1 %v1651_v32, %s1432_s4  ;;  %419 = vrot.lane.b32.xlu0 %v1654_v33, %s1432_s4 }
  0xa7   : >> { %1255 = vmatprep.subr.mxu1 %v1430_v1  ;;  %1220 = vmatprep.subr.mxu0 %v1430_v1 }
  0xa8   : >> { %1256 = vmatpush3.msra.mxu1 %v1430_v1  ;;  %1221 = vmatpush3.msra.mxu0 %v1430_v1 }
  0xa9   : >> { %1257 = vmatprep.subr.mxu1 %v1430_v1  ;;  %1222 = vmatprep.subr.mxu0 %v1430_v1 }
  0xaa   : >> { %1258 = vmatpush3.msra.mxu1 %v1430_v1  ;;  %1223 = vmatpush3.msra.mxu0 %v1430_v1 }
  0xab   : >> { %1259 = vmatprep.subr.mxu1 %v1430_v1  ;;  %1224 = vmatprep.subr.mxu0 %v1430_v1 }
  0xac   : >> { %1260 = vmatpush3.msra.mxu1 %v1430_v1  ;;  %1225 = vmatpush3.msra.mxu0 %v1430_v1 }
  0xad   : >> { %1261 = vmatprep.subr.mxu1 %v1430_v1  ;;  %1226 = vmatprep.subr.mxu0 %v1430_v1 }
  0xae   : >> { %1262 = vmatpush3.msra.mxu1 %v1430_v1  ;;  %1227 = vmatpush3.msra.mxu0 %v1430_v1 }
  0xaf   : >> { %1263 = vmatprep.subr.mxu1 %v1430_v1  ;;  %1228 = vmatprep.subr.mxu0 %v1430_v1 }
  0xb0   : >> { %1264 = vmatpush3.msra.mxu1 %v1430_v1  ;;  %1229 = vmatpush3.msra.mxu0 %v1430_v1 }
  0xb1   : >> { %1265 = vmatprep.subr.mxu1 %v1430_v1  ;;  %1230 = vmatprep.subr.mxu0 %v1430_v1 }
  0xb2   : >> { %1266 = vmatpush3.msra.mxu1 %v1430_v1  ;;  %1231 = vmatpush3.msra.mxu0 %v1430_v1 }
  0xb3   : >> { %1267 = vmatprep.subr.mxu1 %v1430_v1  ;;  %1232 = vmatprep.subr.mxu0 %v1430_v1 }
  0xb4   : >> { %1268 = vmatpush3.msra.mxu1 %v1430_v1  ;;  %1233 = vmatpush3.msra.mxu0 %v1430_v1 }
  0xb5   : >> { %1307 = vmatprep.subr.mxu1 %v1430_v1  ;;  %1272 = vmatprep.subr.mxu0 %v1430_v1 }
 0x10c   : >> { %v386_v34 = vpop.permute.xlu1 %385  ;;  %v378_v35 = vpop.permute.xlu0 %377 }
 0x10d   : >> { %v381_v36 = vmul.f32 %v1590_v14, %v378_v35  ;;  %v389_v37 = vmul.f32 %v1594_v19, %v386_v34 }
 0x10f   : >> { %v383_v38 = vmax.f32 %v1627_v28, %v381_v36 }
 0x110   : >> { %v388_v39 = vpop.permute.xlu1 %387  ;;  %v380_v42 = vpop.permute.xlu0 %379 }
 0x111   : >> { %v390_v43 = vmul.f32 %v1594_v19, %v388_v39  ;;  %v382_v44 = vmul.f32 %v1590_v14, %v380_v42  ;;  %v391_v45 = vmax.f32 %v383_v38, %v389_v37 }
 0x113   : >> { %v384_v46 = vmax.f32 %v1638_v29, %v382_v44  ;;  %v393_v5 = vrot.slane %v391_v45, 7  ;;  %v401_v6 = vrot.slane %v391_v45, 1 }
 0x114   : >> { %v414_v62 = vpop.permute.xlu1 %413  ;;  %v412_v63 = vpop.permute.xlu0 %411 }
 0x115   : >> { %v392_v0 = vmax.f32 %v384_v46, %v390_v43  ;;  %v416_v3 = vmul.f32 %v1590_v14, %v414_v62  ;;  %v415_v4 = vmul.f32 %v1590_v14, %v412_v63 }
 0x117   : >> { %v394_v7 = vrot.slane %v392_v0, 7  ;;  %v402_v8 = vrot.slane %v392_v0, 1  ;;  %v418_v9 = vmax.f32 %v1651_v32, %v416_v3  ;;  %v417_v10 = vmax.f32 %v1654_v33, %v415_v4 }
 0x118   : >> { %v422_v11 = vpop.permute.xlu1 %421  ;;  %v420_v12 = vpop.permute.xlu0 %419 }
 0x119   : >> { %v395_v15 = vsel %vm246_vm0, %v393_v5, %v394_v7  ;;  %v396_v16 = vsel %vm246_vm0, %v394_v7, %v393_v5  ;;  %v403_v17 = vsel %vm1972_vm9, %v401_v6, %v402_v8  ;;  %v404_v20 = vsel %vm1973_vm10, %v402_v8, %v401_v6  ;;  %vm1985_vm9 = vmmov %vm1978_vm2 }
 0x11a   : >> { %v397_v22 = vmul.f32 %v1549_v50, %v396_v16  ;;  %v398_v23 = vmul.f32 %v1552_v51, %v395_v15  ;;  %v424_v24 = vmul.f32 %v1594_v19, %v422_v11  ;;  %v423_v25 = vmul.f32 %v1594_v19, %v420_v12  ;;  %vm1986_vm10 = vmmov %vm1977_vm1 }
 0x11b   : >> { %v405_v30 = vmul.f32 %v1555_v52, %v403_v17  ;;  %v406_v31 = vmul.f32 %v1558_v53, %v404_v20 }
 0x11c   : >> { %v399_v26 = vmax.f32 %v391_v45, %v397_v22  ;;  %v400_v27 = vmax.f32 %v392_v0, %v398_v23  ;;  %v426_v34 = vmax.f32 %v418_v9, %v424_v24  ;;  %v425_v35 = vmax.f32 %v417_v10, %v423_v25 }
 0x11e   : >> { %v407_v36 = vmax.f32 %v399_v26, %v405_v30  ;;  %v408_v37 = vmax.f32 %v400_v27, %v406_v31  ;;  %v428_v38 = vrot.slane %v426_v34, 7  ;;  %v436_v39 = vrot.slane %v426_v34, 1 }
 0x11f   : >> { %v427_v42 = vrot.slane %v425_v35, 7  ;;  %v435_v43 = vrot.slane %v425_v35, 1 }
 0x120   : >> { %v1731_v44 = vsub.f32 %v408_v37, %v1638_v29  ;;  %v409_v46 = vsub.f32 %v407_v36, %v1627_v28 }
 0x121   : >> { %v429_v45 = vsel %vm246_vm0, %v427_v42, %v428_v38  ;;  %v430_v62 = vsel %vm246_vm0, %v428_v38, %v427_v42  ;;  %v438_v63 = vsel %vm1974_vm11, %v436_v39, %v435_v43  ;;  %v437_v0 = vsel %vm1975_vm12, %v435_v43, %v436_v39  ;;  %vm1987_vm11 = vmmov %vm1979_vm3 }
 0x122   : >> { %v431_v3 = vmul.f32 %v1549_v50, %v430_v62  ;;  %v432_v4 = vmul.f32 %v1552_v51, %v429_v45  ;;  %v440_v29 = vmul.f32 %v1558_v53, %v438_v63  ;;  %v1747_v28 = vmul.f32 %v1546_v49, %v1731_v44 }
 0x123   : >> { %v1750_v5 = vmul.f32 %v1546_v49, %v409_v46  ;;  %v439_v6 = vmul.f32 %v1555_v52, %v437_v0  ;;  %v1773_v17 = vmul.f32 %v1538_v47, %v409_v46  ;;  %v1833_v20 = vmul.f32 %v1542_v48, %v1731_v44 }
 0x124   : >> { %v433_v7 = vmax.f32 %v425_v35, %v431_v3  ;;  %449 = vrot.lane.b32.xlu1 %v1747_v28, %s1433_s5  ;;  %v434_v8 = vmax.f32 %v426_v34, %v432_v4  ;;  %vm1436_vm12 = vmmov 0  }
 0x125   : >> { %447 = vrot.lane.b32.xlu0 %v1750_v5, %s1433_s5 }
 0x126   : >> { %v441_v9 = vmax.f32 %v433_v7, %v439_v6  ;;  %v442_v10 = vmax.f32 %v434_v8, %v440_v29 }
 0x128   : >> { %457 = vrot.lane.b32.xlu1 %v1747_v28, %s1432_s4  ;;  %v443_v11 = vsub.f32 %v441_v9, %v1654_v33  ;;  %v444_v12 = vsub.f32 %v442_v10, %v1651_v32 }
 0x129   : >> { %455 = vrot.lane.b32.xlu0 %v1750_v5, %s1432_s4 }
 0x12a   : >> { %v1764_v15 = vmul.f32 %v1538_v47, %v443_v11  ;;  %v1767_v16 = vmul.f32 %v1542_v48, %v444_v12  ;;  %v1782_v32 = vmul.f32 %v1546_v49, %v444_v12  ;;  %v1787_v33 = vmul.f32 %v1546_v49, %v443_v11 }
 0x12c   : >> { %1269 = vmatprep.mubr.f32.mxu1 %v1764_v15  ;;  %465 = vrot.lane.b32.xlu1 %v1747_v28, %s1434_s6 }
 0x12d   : >> { %1270 = vmatmul.mubr.f32.vlgmr.msra.gmra.mxu1 %v1767_v16  ;;  %463 = vrot.lane.b32.xlu0 %v1750_v5, %s1434_s6 }
 0x12e   : >> { %1308 = vmatpush3.msra.mxu1 %v1430_v1  ;;  %1339 = vmatprep.mubr.f32.mxu1 %v1773_v17 }
 0x12f   : >> { %1309 = vmatprep.subr.mxu1 %v1430_v1 }
 0x130   : >> { %1310 = vmatpush3.msra.mxu1 %v1430_v1  ;;  %473 = vrot.lane.b32.xlu1 %v1747_v28, %s1435_s7 }
 0x131   : >> { %1311 = vmatprep.subr.mxu1 %v1430_v1  ;;  %471 = vrot.lane.b32.xlu0 %v1750_v5, %s1435_s7 }
 0x132   : >> { %1312 = vmatpush3.msra.mxu1 %v1430_v1 }
 0x133   : >> { %1313 = vmatprep.subr.mxu1 %v1430_v1 }
 0x134   : >> { %1314 = vmatpush3.msra.mxu1 %v1430_v1  ;;  %515 = vrot.lane.b32.xlu1 %v1782_v32, %s1433_s5 }
 0x135   : >> { %1315 = vmatprep.subr.mxu1 %v1430_v1  ;;  %513 = vrot.lane.b32.xlu0 %v1787_v33, %s1433_s5 }
 0x136   : >> { %1316 = vmatpush3.msra.mxu1 %v1430_v1 }
 0x137   : >> { %1317 = vmatprep.subr.mxu1 %v1430_v1 }
 0x138   : >> { %1318 = vmatpush3.msra.mxu1 %v1430_v1  ;;  %523 = vrot.lane.b32.xlu1 %v1782_v32, %s1432_s4 }
 0x139   : >> { %1319 = vmatprep.subr.mxu1 %v1430_v1  ;;  %521 = vrot.lane.b32.xlu0 %v1787_v33, %s1432_s4 }
 0x13a   : >> { %1320 = vmatpush3.msra.mxu1 %v1430_v1 }
 0x13b   : >> { %1321 = vmatprep.subr.mxu1 %v1430_v1 }
 0x13c   : >> { %1322 = vmatpush3.msra.mxu1 %v1430_v1  ;;  %531 = vrot.lane.b32.xlu1 %v1782_v32, %s1434_s6 }
 0x13d   : >> { %1323 = vmatprep.subr.mxu1 %v1430_v1  ;;  %529 = vrot.lane.b32.xlu0 %v1787_v33, %s1434_s6 }
 0x13e   : >> { %1324 = vmatpush3.msra.mxu1 %v1430_v1 }
 0x13f   : >> { %1325 = vmatprep.subr.mxu1 %v1430_v1 }
 0x140   : >> { %1326 = vmatpush3.msra.mxu1 %v1430_v1  ;;  %539 = vrot.lane.b32.xlu1 %v1782_v32, %s1435_s7 }
 0x141   : >> { %1327 = vmatprep.subr.mxu1 %v1430_v1  ;;  %537 = vrot.lane.b32.xlu0 %v1787_v33, %s1435_s7 }
 0x142   : >> { %1328 = vmatpush3.msra.mxu1 %v1430_v1 }
 0x143   : >> { %1329 = vmatprep.subr.mxu1 %v1430_v1 }
 0x144   : >> { %1330 = vmatpush3.msra.mxu1 %v1430_v1 }
 0x145   : >> { %1331 = vmatprep.subr.mxu1 %v1430_v1 }
 0x146   : >> { %1332 = vmatpush3.msra.mxu1 %v1430_v1 }
 0x147   : >> { %1333 = vmatprep.subr.mxu1 %v1430_v1 }
 0x148   : >> { %1334 = vmatpush3.msra.mxu1 %v1430_v1 }
 0x149   : >> { %1335 = vmatprep.subr.mxu1 %v1430_v1 }
 0x14a   : >> { %1336 = vmatpush3.msra.mxu1 %v1430_v1 }
 0x14b   : >> { %1337 = vmatprep.subr.mxu1 %v1430_v1 }
 0x14c   : >> { %1338 = vmatpush3.msra.mxu1 %v1430_v1 }
 0x14d   : >> { %1340 = vmatmul.mubr.f32.vlgmr.msra.gmra.mxu1 %v1833_v20 }
 0x196   : >> { %v450_v22 = vpop.permute.xlu1 %449 }
 0x197   : >> { %v448_v23 = vpop.permute.xlu0 %447  ;;  %v452_v25 = vmul.f32 %v1590_v14, %v450_v22 }
 0x198   : >> { %v451_v27 = vmul.f32 %v1590_v14, %v448_v23 }
 0x199   : >> { %v454_v35 = vmax.f32 %v1747_v28, %v452_v25 }
 0x19a   : >> { %v458_v24 = vpop.permute.xlu1 %457  ;;  %v453_v38 = vmax.f32 %v1750_v5, %v451_v27 }
 0x19b   : >> { %v456_v26 = vpop.permute.xlu0 %455  ;;  %v460_v30 = vmul.f32 %v1594_v19, %v458_v24 }
 0x19c   : >> { %v459_v31 = vmul.f32 %v1594_v19, %v456_v26 }
 0x19d   : >> { %v462_v42 = vmax.f32 %v454_v35, %v460_v30 }
 0x19e   : >> { %v466_v34 = vpop.permute.xlu1 %465  ;;  %v461_v43 = vmax.f32 %v453_v38, %v459_v31 }
 0x19f   : >> { %v468_v36 = vmul.f32 %v1588_v13, %v466_v34  ;;  %v464_v37 = vpop.permute.xlu0 %463 }
 0x1a0   : >> { %v467_v39 = vmul.f32 %v1588_v13, %v464_v37 }
 0x1a1   : >> { %v470_v46 = vmax.f32 %v462_v42, %v468_v36 }
 0x1a2   : >> { %v474_v44 = vpop.permute.xlu1 %473  ;;  %v469_v63 = vmax.f32 %v461_v43, %v467_v39 }
 0x1a3   : >> { %v476_v45 = vmul.f32 %v1592_v18, %v474_v44  ;;  %v472_v62 = vpop.permute.xlu0 %471 }
 0x1a4   : >> { %v475_v0 = vmul.f32 %v1592_v18, %v472_v62 }
 0x1a5   : >> { %v478_v3 = vmax.f32 %v470_v46, %v476_v45 }
 0x1a6   : >> { %v477_v4 = vmax.f32 %v469_v63, %v475_v0  ;;  %v516_v29 = vpop.permute.xlu1 %515 }
 0x1a7   : >> { %v514_v28 = vpop.permute.xlu0 %513  ;;  %v480_v6 = vrot.slane %v478_v3, 7  ;;  %v488_v7 = vrot.slane %v478_v3, 1  ;;  %v496_v8 = vrot.slane %v478_v3, 6  ;;  %v518_v5 = vmul.f32 %v1590_v14, %v516_v29 }
 0x1a8   : >> { %v479_v9 = vrot.slane %v477_v4, 7  ;;  %v487_v10 = vrot.slane %v477_v4, 1  ;;  %v495_v11 = vrot.slane %v477_v4, 6  ;;  %v503_v12 = vrot.slane %v477_v4, 2 }
 0x1a9   : >> { %v504_v26 = vrot.slane %v478_v3, 2  ;;  %v517_v27 = vmul.f32 %v1590_v14, %v514_v28  ;;  %v520_v34 = vmax.f32 %v1782_v32, %v518_v5 }
 0x1aa   : >> { %v524_v22 = vpop.permute.xlu1 %523  ;;  %v482_v23 = vsel %vm246_vm0, %v480_v6, %v479_v9  ;;  %v489_v24 = vsel %vm1976_vm15, %v487_v10, %v488_v7  ;;  %v498_v25 = vsel %vm1977_vm1, %v496_v8, %v495_v11  ;;  %v481_v36 = vsel %vm246_vm0, %v479_v9, %v480_v6 }
 0x1ab   : >> { %v522_v30 = vpop.permute.xlu0 %521  ;;  %v483_v31 = vmul.f32 %v1549_v50, %v482_v23  ;;  %v526_v35 = vmul.f32 %v1594_v19, %v524_v22  ;;  %v490_v37 = vsel %vm1978_vm2, %v488_v7, %v487_v10  ;;  %v491_v39 = vmul.f32 %v1555_v52, %v489_v24 }
 0x1ac   : >> { %v499_v42 = vmul.f32 %v1560_v54, %v498_v25  ;;  %v484_v43 = vmul.f32 %v1552_v51, %v481_v36  ;;  %v525_v44 = vmul.f32 %v1594_v19, %v522_v30  ;;  %v505_v32 = vsel %vm1979_vm3, %v503_v12, %v504_v26 }
 0x1ad   : >> { %v485_v38 = vmax.f32 %v477_v4, %v483_v31  ;;  %v492_v45 = vmul.f32 %v1558_v53, %v490_v37  ;;  %v497_v62 = vsel %vm1980_vm4, %v495_v11, %v496_v8  ;;  %v506_v28 = vsel %vm1981_vm5, %v504_v26, %v503_v12 }
 0x1ae   : >> { %v532_v46 = vpop.permute.xlu1 %531  ;;  %v486_v29 = vmax.f32 %v478_v3, %v484_v43  ;;  %v519_v6 = vmax.f32 %v1787_v33, %v517_v27  ;;  %v528_v7 = vmax.f32 %v520_v34, %v526_v35  ;;  %v507_v10 = vmul.f32 %v1564_v56, %v505_v32 }
 0x1af   : >> { %v534_v63 = vmul.f32 %v1588_v13, %v532_v46  ;;  %v530_v0 = vpop.permute.xlu0 %529  ;;  %v493_v4 = vmax.f32 %v485_v38, %v491_v39  ;;  %v500_v23 = vmul.f32 %v1562_v55, %v497_v62  ;;  %v508_v24 = vmul.f32 %v1566_v57, %v506_v28 }
 0x1b0   : >> { %v533_v5 = vmul.f32 %v1588_v13, %v530_v0  ;;  %v494_v22 = vmax.f32 %v486_v29, %v492_v45  ;;  %v527_v8 = vmax.f32 %v519_v6, %v525_v44  ;;  %vm899_vm15 = vcmask 130048  }
 0x1b1   : >> { %v501_v9 = vmax.f32 %v493_v4, %v499_v42  ;;  %v536_v25 = vmax.f32 %v528_v7, %v534_v63 }
 0x1b2   : >> { %v540_v11 = vpop.permute.xlu1 %539  ;;  %v502_v26 = vmax.f32 %v494_v22, %v500_v23  ;;  %v535_v33 = vmax.f32 %v527_v8, %v533_v5 }
 0x1b3   : >> { %v542_v3 = vmul.f32 %v1592_v18, %v540_v11  ;;  %v538_v30 = vpop.permute.xlu0 %537  ;;  %v509_v12 = vmax.f32 %v501_v9, %v507_v10 }
 0x1b4   : >> { %v541_v27 = vmul.f32 %v1592_v18, %v538_v30  ;;  %v510_v35 = vmax.f32 %v502_v26, %v508_v24 }
 0x1b5   : >> { %v544_v31 = vmax.f32 %v536_v25, %v542_v3  ;;  %v581_v34 = vmul.f32 %v1764_v15, %v509_v12 }
 0x1b6   : >> { %v543_v36 = vmax.f32 %v535_v33, %v541_v27  ;;  %v582_v38 = vmul.f32 %v1767_v16, %v510_v35 }
 0x1b7   : >> { %v546_v37 = vrot.slane %v544_v31, 7  ;;  %1234 = vmatprep.mubr.f32.mxu0 %v581_v34  ;;  %v554_v39 = vrot.slane %v544_v31, 1  ;;  %v562_v46 = vrot.slane %v544_v31, 6  ;;  %v570_v62 = vrot.slane %v544_v31, 2 }
 0x1b8   : >> { %v545_v42 = vrot.slane %v543_v36, 7  ;;  %v553_v43 = vrot.slane %v543_v36, 1  ;;  %v561_v44 = vrot.slane %v543_v36, 6  ;;  %1235 = vmatmul.mubr.f32.vlgmr.msra.gmra.mxu0 %v582_v38  ;;  %v569_v45 = vrot.slane %v543_v36, 2 }
 0x1b9   : >> { %1273 = vmatpush3.msra.mxu0 %v1430_v1 }
 0x1ba   : >> { %v548_v32 = vsel %vm246_vm0, %v546_v37, %v545_v42  ;;  %v555_v15 = vsel %vm1982_vm6, %v553_v43, %v554_v39  ;;  %1274 = vmatprep.subr.mxu0 %v1430_v1  ;;  %v564_v63 = vsel %vm1983_vm7, %v562_v46, %v561_v44  ;;  %v571_v29 = vsel %vm1984_vm8, %v569_v45, %v570_v62 }
 0x1bb   : >> { %v549_v16 = vmul.f32 %v1549_v50, %v548_v32  ;;  %1275 = vmatpush3.msra.mxu0 %v1430_v1  ;;  %v557_v4 = vmul.f32 %v1555_v52, %v555_v15  ;;  %v565_v6 = vmul.f32 %v1560_v54, %v564_v63  ;;  %v547_v7 = vsel %vm246_vm0, %v545_v42, %v546_v37 }
 0x1bc   : >> { %1276 = vmatprep.subr.mxu0 %v1430_v1  ;;  %v573_v9 = vmul.f32 %v1564_v56, %v571_v29  ;;  %v550_v10 = vmul.f32 %v1552_v51, %v547_v7  ;;  %v556_v8 = vsel %vm1985_vm9, %v554_v39, %v553_v43  ;;  %v572_v30 = vsel %vm1987_vm11, %v570_v62, %v569_v45 }
 0x1bd   : >> { %v551_v0 = vmax.f32 %v543_v36, %v549_v16  ;;  %1277 = vmatpush3.msra.mxu0 %v1430_v1  ;;  %v558_v24 = vmul.f32 %v1558_v53, %v556_v8  ;;  %v574_v26 = vmul.f32 %v1566_v57, %v572_v30 }
 0x1be   : >> { %1278 = vmatprep.subr.mxu0 %v1430_v1  ;;  %v552_v11 = vmax.f32 %v544_v31, %v550_v10 }
 0x1bf   : >> { %v559_v28 = vmax.f32 %v551_v0, %v557_v4  ;;  %1279 = vmatpush3.msra.mxu0 %v1430_v1 }
 0x1c0   : >> { %1280 = vmatprep.subr.mxu0 %v1430_v1  ;;  %v560_v25 = vmax.f32 %v552_v11, %v558_v24 }
 0x1c1   : >> { %v567_v5 = vmax.f32 %v559_v28, %v565_v6  ;;  %1281 = vmatpush3.msra.mxu0 %v1430_v1 }
 0x1c2   : >> { %1282 = vmatprep.subr.mxu0 %v1430_v1 }
 0x1c3   : >> { %v575_v22 = vmax.f32 %v567_v5, %v573_v9  ;;  %1283 = vmatpush3.msra.mxu0 %v1430_v1 }
 0x1c4   : >> { %1284 = vmatprep.subr.mxu0 %v1430_v1 }
 0x1c5   : >> { %v739_v23 = vmul.f32 %v1773_v17, %v575_v22  ;;  %1285 = vmatpush3.msra.mxu0 %v1430_v1  ;;  %v563_v17 = vsel %vm1986_vm10, %v561_v44, %v562_v46 }
 0x1c6   : >> { %1286 = vmatprep.subr.mxu0 %v1430_v1  ;;  %v566_v3 = vmul.f32 %v1562_v55, %v563_v17 }
 0x1c7   : >> { %1304 = vmatprep.mubr.f32.mxu0 %v739_v23  ;;  %1287 = vmatpush3.msra.mxu0 %v1430_v1 }
 0x1c8   : >> { %1288 = vmatprep.subr.mxu0 %v1430_v1  ;;  %v568_v12 = vmax.f32 %v560_v25, %v566_v3 }
 0x1c9   : >> { %1289 = vmatpush3.msra.mxu0 %v1430_v1 }
 0x1ca   : >> { %1290 = vmatprep.subr.mxu0 %v1430_v1  ;;  %v576_v33 = vmax.f32 %v568_v12, %v574_v26 }
 0x1cb   : >> { %1291 = vmatpush3.msra.mxu0 %v1430_v1 }
 0x1cc   : >> { %1292 = vmatprep.subr.mxu0 %v1430_v1  ;;  %v740_v27 = vmul.f32 %v1833_v20, %v576_v33 }
 0x1cd   : >> { %1293 = vmatpush3.msra.mxu0 %v1430_v1 }
 0x1ce   : >> { %1294 = vmatprep.subr.mxu0 %v1430_v1 }
 0x1cf   : >> { %1295 = vmatpush3.msra.mxu0 %v1430_v1 }
 0x1d0   : >> { %1296 = vmatprep.subr.mxu0 %v1430_v1 }
 0x1d1   : >> { %1297 = vmatpush3.msra.mxu0 %v1430_v1 }
 0x1d2   : >> { %1298 = vmatprep.subr.mxu0 %v1430_v1 }
 0x1d3   : >> { %1299 = vmatpush3.msra.mxu0 %v1430_v1 }
 0x1d4   : >> { %1300 = vmatprep.subr.mxu0 %v1430_v1 }
 0x1d5   : >> { %1301 = vmatpush3.msra.mxu0 %v1430_v1 }
 0x1d6   : >> { %1302 = vmatprep.subr.mxu0 %v1430_v1 }
 0x1d7   : >> { %1303 = vmatpush3.msra.mxu0 %v1430_v1 }
 0x1d8   : >> { %1305 = vmatmul.mubr.f32.vlgmr.msra.gmra.mxu0 %v740_v27  ;;  %1342 = vmatprep.subr.mxu0 %v1431_v21 }
 0x1d9   : >> { %1346 = vmatprep.mubr.msk.f32.mxu0 %vm1436_vm12, %v1431_v21 }
 0x1ed   : >> { %v1271_v31 = vpop.f32.mrf.mxu1 }
 0x1ee   : >> { %v736_v39 = vmul.f32 %v1271_v31, %v1574_v59 }
 0x1ef   : >> { %v726_v35 = vpop.f32.mrf.mxu1 }
 0x1f0   : >> { %v735_v43 = vmul.f32 %v1574_v59, %v726_v35 }
 0x20d   : >> { %v1341_v38 = vpop.f32.mrf.mxu1 }
 0x20e   : >> { %v896_v45 = vmul.f32 %v1341_v38, %v1582_v61 }
 0x20f   : >> { %v886_v32 = vpop.f32.mrf.mxu1 }
 0x210   : >> { %v895_v0 = vmul.f32 %v1582_v61, %v886_v32 }
 0x278   : >> { %v1236_v34 = vpop.f32.mrf.mxu0 }
 0x279   : >> { %v659_v37 = vmul.f32 %v1236_v34, %v1570_v58 }
 0x27a   : >> { %v649_v36 = vpop.f32.mrf.mxu0 }
 0x27b   : >> { %v658_v42 = vmul.f32 %v1570_v58, %v649_v36  ;;  %v738_v44 = vadd.f32 %v736_v39, %v659_v37 }
 0x27d   : >> { %v737_v62 = vadd.f32 %v735_v43, %v658_v42 }
 0x298   : >> { %v1306_v20 = vpop.f32.mrf.mxu0 }
 0x299   : >> { %v817_v46 = vmul.f32 %v1306_v20, %v1578_v60 }
 0x29a   : >> { %v807_v15 = vpop.f32.mrf.mxu0 }
 0x29b   : >> { %v819_v16 = vadd.f32 %v817_v46, %v738_v44  ;;  %v816_v63 = vmul.f32 %v1578_v60, %v807_v15 }
 0x29d   : >> { %v898_v4 = vadd.f32 %v896_v45, %v819_v16  ;;  %v818_v29 = vadd.f32 %v816_v63, %v737_v62 }
 0x29f   : >> { %v897_v28 = vadd.f32 %v895_v0, %v818_v29  ;;  %1343 = vmatpush3.msra.mxu0 %v898_v4 }
 0x2a0   : >> { %1344 = vmatprep.subr.mxu0 %v1431_v21 }
 0x2a1   : >> { %1345 = vmatpush3.msra.mxu0 %v897_v28 }
 0x2a2   : >> { %1347 = vmatmul.mubr.msk.f32.vlgmr.msra.gmra.mxu0 %vm899_vm15, %v1430_v1 }
 0x360   : > { %354 = sbr.rel (!%p352_p5) target bundleno = 144 (0x90), region = 70 }
 0x362   : >> { %v969_v6 = vpop.f32.mrf.mxu0 }
 0x363   : >> { %974 = vst [vmem:[%s973_s8] sm:$0x1] %v969_v6 }
 0x364   : >> { %v1348_v7 = vpop.f32.mrf.mxu0 }
 0x365 PF: > { %s12_s11 = sadd.s32 1, %s1419_s11   ;;  %s1988_s9 = smov %s1415_s10 }
 0x366   : > { %p9_p6 = scmp.ge.s32.totalorder %s12_s11, 4   ;;  %s1989_s10 = smov %s1991_s12 }
 0x368   :  { %11 = sbr.rel (!%p9_p6) target bundleno = 2 (0x2), region = 81 }

</bundles_post_ra>
